<compile_context>
chip_gen: v7x
topology: tpu7x:2x2x1
jax: 0.10.0
libtpu: 0.0.40
codegen_flags: <defaults>
</compile_context>

<pallas_src>
import functools

import jax
import jax.numpy as jnp
from jax.experimental import pallas as pl
from jax.experimental.pallas import tpu as pltpu

_HALO_W = 128  # lane width of the "previous-tile tail" re-read block


def _causal_conv1d_kernel(x_ref, xprev_ref, w_ref, b_ref, o_ref, patch_ref, *,
                          cin, cin_pad, k_size, dilation, tile_l, tile_b):
    # x_ref    : (TB, Cin, TL)            current input tile
    # xprev_ref: (TB, Cin, 128)           last 128 cols of the previous L tile
    # w_ref    : (Cout, K*Cin_pad)        taps folded into the contraction
    # b_ref    : (Cout, 1)                bias (f32)
    # o_ref    : (TB, Cout, TL)           output tile
    # patch_ref: (K*Cin_pad, TB*TL)       im2col scratch (compute dtype)
    halo = (k_size - 1) * dilation
    cdt = patch_ref.dtype
    pad = cin_pad - cin
    is_first = pl.program_id(1) == 0
    zpad = jnp.zeros((pad, tile_l), cdt) if pad else None   # hoisted once
    base = (k_size - 1) * cin_pad                            # zero-shift band

    for t in range(tile_b):
        col0 = t * tile_l
        if halo > 0:
            # Causal halo: tail of the previous tile, zeros on the first tile.
            prev_tail = xprev_ref[t, :, _HALO_W - halo:_HALO_W]     # (Cin, halo)
            prev_tail = jnp.where(is_first, jnp.zeros_like(prev_tail), prev_tail)
            prev_tail = prev_tail.astype(cdt)

        # Zero-shift tap: cast x once into its sublane-aligned band.
        patch_ref[base:base + cin, col0:col0 + tile_l] = x_ref[t].astype(cdt)
        if pad:
            patch_ref[base + cin:base + cin_pad, col0:col0 + tile_l] = zpad

        # Remaining taps: shifted copies of the already-cast band, with the
        # first h columns patched from the previous tile's tail.
        for k in range(k_size - 1):
            h = (k_size - 1 - k) * dilation          # right shift for tap k
            r0 = k * cin_pad
            if h < tile_l:
                patch_ref[r0:r0 + cin, col0 + h:col0 + tile_l] = \
                    patch_ref[base:base + cin, col0:col0 + tile_l - h]
            patch_ref[r0:r0 + cin, col0:col0 + h] = prev_tail[:, halo - h:halo]
            if pad:
                patch_ref[r0 + cin:r0 + cin_pad, col0:col0 + tile_l] = zpad

    # One fused MXU matmul for all taps (and all TB rows); f32 accumulation.
    acc = jnp.dot(w_ref[...], patch_ref[...], preferred_element_type=jnp.float32)
    acc = acc + b_ref[...]
    for t in range(tile_b):
        o_ref[t] = acc[:, t * tile_l:(t + 1) * tile_l].astype(o_ref.dtype)


def _physical_vmem_bytes():
    try:
        info = pltpu.get_tpu_info()
        v = getattr(info, "vmem_capacity_bytes", None)
        if v:
            return int(v)
    except Exception:
        pass
    return 64 << 20  # conservative: assume v7x-sized VMEM


def _vmem_bytes(tb, tl, cin, cin_pad, cout, k, in_isz, out_isz, cm_isz):
    x_blk = 2 * tb * cin * tl * in_isz          # double-buffered x tile
    xp_blk = 2 * tb * cin * _HALO_W * in_isz    # double-buffered prev-tail tile
    o_blk = 2 * tb * cout * tl * out_isz        # double-buffered output tile
    w_res = 2 * cout * k * cin_pad * cm_isz     # resident folded weight
    b_res = 2 * cout * 4
    patch = k * cin_pad * tb * tl * cm_isz      # im2col scratch
    acc = cout * tb * tl * 4                    # f32 matmul result
    return x_blk + xp_blk + o_blk + w_res + b_res + patch + acc


def _choose_tiles(B, L_pad, cin, cin_pad, cout, k, in_isz, out_isz, cm_isz, budget):
    est = functools.partial(_vmem_bytes, cin=cin, cin_pad=cin_pad, cout=cout,
                            k=k, in_isz=in_isz, out_isz=out_isz, cm_isz=cm_isz)
    tl = 128
    for cand in (8192, 4096, 2048, 1024, 512, 256, 128):
        if L_pad % cand == 0 and est(1, cand) <= budget:
            tl = cand
            break
    tb = 1
    if k * cin_pad <= 512 and cout <= 512:      # small-channel regime only
        for cand in (8, 4, 2):
            if B % cand == 0 and est(cand, tl) <= budget:
                tb = cand
                break
    return tb, tl


def causal_conv1d(x, weight, bias, *, dilation=1, tile_l=None, tile_b=None,
                  compute_dtype=None):
    """x: (B, Cin, L); weight: (Cout, Cin, K); bias: (Cout,) -> (B, Cout, L)."""
    B, Cin, L = x.shape
    Cout, Cin_w, K = weight.shape
    assert Cin_w == Cin
    halo = (K - 1) * dilation
    # TODO(synk): (K-1)*dilation > 128 would need a wider previous-tile block;
    # not needed for typical causal-conv kernel sizes / dilations.
    assert 0 <= halo <= _HALO_W, "(kernel_size-1)*dilation must be <= 128"
    # TODO(synk): extra Conv1d kwargs (stride!=1, groups!=1, explicit padding)
    # are not implemented; the module's default stride-1, groups-1 path is.

    out_dtype = x.dtype
    compute_dtype = (jnp.dtype(compute_dtype) if compute_dtype is not None
                     else jnp.dtype(x.dtype))
    in_isz = jnp.dtype(x.dtype).itemsize
    out_isz = jnp.dtype(out_dtype).itemsize
    cm_isz = compute_dtype.itemsize
    sub = {4: 8, 2: 16, 1: 32}[cm_isz]
    cin_pad = ((Cin + sub - 1) // sub) * sub

    # Always lane-dense output tiles: pad L to a multiple of 128, slice at end.
    L_pad = ((max(L, 1) + 127) // 128) * 128
    x_p = jnp.pad(x, ((0, 0), (0, 0), (0, L_pad - L))) if L_pad != L else x

    phys_vmem = _physical_vmem_bytes()
    limit_cap = min(max(phys_vmem - (16 << 20), 32 << 20), 96 << 20)
    budget = min(limit_cap // 2, 48 << 20)

    auto_tb, auto_tl = _choose_tiles(B, L_pad, Cin, cin_pad, Cout, K,
                                     in_isz, out_isz, cm_isz, budget)
    tile_l = auto_tl if tile_l is None else tile_l
    tile_b = auto_tb if tile_b is None else tile_b
    assert tile_l % 128 == 0 and L_pad % tile_l == 0
    assert B % tile_b == 0
    nL = L_pad // tile_l
    nB = B // tile_b
    ratio = tile_l // _HALO_W

    # Fold taps into the contraction dim with sublane-padded Cin:
    # w2[o, k*Cin_pad + c] = W[o, c, k] (zero for padded channels).
    w_t = jnp.transpose(weight, (0, 2, 1))              # (Cout, K, Cin)
    if cin_pad != Cin:
        w_t = jnp.pad(w_t, ((0, 0), (0, 0), (0, cin_pad - Cin)))
    w2 = w_t.reshape(Cout, K * cin_pad).astype(compute_dtype)
    bias2d = bias.reshape(Cout, 1).astype(jnp.float32)

    kernel = functools.partial(
        _causal_conv1d_kernel, cin=Cin, cin_pad=cin_pad, k_size=K,
        dilation=dilation, tile_l=tile_l, tile_b=tile_b)

    est = _vmem_bytes(tile_b, tile_l, Cin, cin_pad, Cout, K,
                      in_isz, out_isz, cm_isz)
    vmem_limit = int(min(max(2 * est, 4 << 20), limit_cap))

    out = pl.pallas_call(
        kernel,
        out_shape=jax.ShapeDtypeStruct((B, Cout, L_pad), out_dtype),
        grid_spec=pltpu.PrefetchScalarGridSpec(
            num_scalar_prefetch=0,
            grid=(nB, nL),
            in_specs=[
                # current x tile
                pl.BlockSpec((tile_b, Cin, tile_l), lambda b, l: (b, 0, l)),
                # last 128 columns of the previous L tile (unused/masked at l==0)
                pl.BlockSpec((tile_b, Cin, _HALO_W),
                             lambda b, l: (b, 0, jnp.maximum(l * ratio - 1, 0))),
                # folded weight (resident)
                pl.BlockSpec((Cout, K * cin_pad), lambda b, l: (0, 0)),
                # bias
                pl.BlockSpec((Cout, 1), lambda b, l: (0, 0)),
            ],
            out_specs=pl.BlockSpec((tile_b, Cout, tile_l), lambda b, l: (b, 0, l)),
            scratch_shapes=[
                pltpu.VMEM((K * cin_pad, tile_b * tile_l), compute_dtype),
            ],
        ),
        compiler_params=pltpu.CompilerParams(
            # No cross-step state: both axes are independent -> megacore can
            # shard either axis (important on v7x with 2 TCs when B is small).
            dimension_semantics=("parallel", "parallel"),
            vmem_limit_bytes=vmem_limit,
        ),
    )(x_p, x_p, w2, bias2d)

    return out if L_pad == L else out[:, :, :L]


def _reference_causal_conv1d(x, weight, bias, *, dilation=1):
    """Plain-JAX reference (matches torch Conv1d on left-padded input)."""
    K = weight.shape[2]
    left_pad = (K - 1) * dilation
    x_pad = jnp.pad(x, ((0, 0), (0, 0), (left_pad, 0)))
    out = jax.lax.conv_general_dilated(
        x_pad, weight, window_strides=(1,), padding="VALID",
        rhs_dilation=(dilation,), dimension_numbers=("NCH", "OIH", "NCH"))
    return out + bias.reshape(1, -1, 1)


if __name__ == "__main__":
    key = jax.random.PRNGKey(0)

    # --- test 1: small shapes consistent with the module's forward ---------
    B, Cin, Cout, L = 2, 4, 8, 16
    K, dilation = 3, 2
    kx, kw, kb, kx2, kw2, kb2 = jax.random.split(key, 6)

    x = jax.random.normal(kx, (B, Cin, L), dtype=jnp.float32)
    bound = 1.0 / jnp.sqrt(jnp.float32(Cin * K))
    weight = jax.random.uniform(kw, (Cout, Cin, K), jnp.float32, -bound, bound)
    bias = jax.random.uniform(kb, (Cout,), jnp.float32, -bound, bound)

    out = jax.block_until_ready(causal_conv1d(x, weight, bias, dilation=dilation))
    ref = _reference_causal_conv1d(x, weight, bias, dilation=dilation)
    assert out.shape == (B, Cout, L)
    assert jnp.allclose(out, ref, atol=1e-5, rtol=1e-5)

    # --- test 2: multi-tile path (exercises the prev-128-column halo read) --
    B2, Cin2, Cout2, L2 = 2, 8, 8, 256
    x2 = jax.random.normal(kx2, (B2, Cin2, L2), dtype=jnp.float32)
    bound2 = 1.0 / jnp.sqrt(jnp.float32(Cin2 * K))
    weight2 = jax.random.uniform(kw2, (Cout2, Cin2, K), jnp.float32, -bound2, bound2)
    bias2 = jax.random.uniform(kb2, (Cout2,), jnp.float32, -bound2, bound2)

    out2 = jax.block_until_ready(
        causal_conv1d(x2, weight2, bias2, dilation=dilation, tile_l=128))
    ref2 = _reference_causal_conv1d(x2, weight2, bias2, dilation=dilation)
    assert jnp.allclose(out2, ref2, atol=1e-5, rtol=1e-5)

    # --- test 3: bf16 MXU operands with f32 accumulation (looser tolerance) -
    out_bf16 = jax.block_until_ready(
        causal_conv1d(x, weight, bias, dilation=dilation,
                      compute_dtype=jnp.bfloat16))
    assert jnp.allclose(out_bf16, ref, atol=1e-1, rtol=1e-1)

    print("KERNEL_OK")
</pallas_src>

<mosaic_0001>
module attributes {stable_mosaic.version = 11 : i64} {
  func.func @_causal_conv1d_kernel(%arg0: i32, %arg1: i32, %arg2: memref<2x4x128xf32, #tpu.memory_space<vmem>>, %arg3: memref<2x4x128xf32, #tpu.memory_space<vmem>>, %arg4: memref<8x24xf32, #tpu.memory_space<vmem>>, %arg5: memref<8x1xf32, #tpu.memory_space<vmem>>, %arg6: memref<2x8x128xf32, #tpu.memory_space<vmem>>, %arg7: memref<24x256xf32, #tpu.memory_space<vmem>>) attributes {dimension_semantics = [#tpu.dimension_semantics<parallel>, #tpu.dimension_semantics<parallel>], iteration_bounds = array<i64: 1, 1>, scalar_prefetch = 0 : i64, scratch_operands = 1 : i64, tpu.core_type = #tpu.core_type<tc>, window_params = [{transform_indices = @transform_0, window_bounds = array<i64: 2, 4, 128>}, {transform_indices = @transform_1, window_bounds = array<i64: 2, 4, 128>}, {pipeline_mode = #tpu.pipeline_mode<synchronous>, transform_indices = @transform_2, window_bounds = array<i64: 8, 24>}, {pipeline_mode = #tpu.pipeline_mode<synchronous>, transform_indices = @transform_3, window_bounds = array<i64: 8, 1>}, {transform_indices = @transform_4, window_bounds = array<i64: 2, 8, 128>}]} {
    %c0_i32 = arith.constant 0 : i32
    %0 = arith.cmpi eq, %arg1, %c0_i32 : i32
    %cst = arith.constant 0.000000e+00 : f32
    %1 = vector.broadcast %cst : f32 to vector<4x128xf32>
    %c0 = arith.constant 0 : index
    %c0_0 = arith.constant 0 : index
    %c124 = arith.constant 124 : index
    %2 = vector.load %arg3[%c0, %c0_0, %c124] : memref<2x4x128xf32, #tpu.memory_space<vmem>>, vector<1x4x4xf32>
    %3 = vector.shape_cast %2 : vector<1x4x4xf32> to vector<4x4xf32>
    %cst_1 = arith.constant 0.000000e+00 : f32
    %4 = vector.broadcast %cst_1 : f32 to vector<4x4xf32>
    %5 = arith.select %0, %4, %3 : vector<4x4xf32>
    %c0_2 = arith.constant 0 : index
    %c0_3 = arith.constant 0 : index
    %c0_4 = arith.constant 0 : index
    %6 = vector.load %arg2[%c0_2, %c0_3, %c0_4] : memref<2x4x128xf32, #tpu.memory_space<vmem>>, vector<1x4x128xf32>
    %7 = vector.shape_cast %6 : vector<1x4x128xf32> to vector<4x128xf32>
    %c16 = arith.constant 16 : index
    %c0_5 = arith.constant 0 : index
    %8 = vector.load %arg7[%c16, %c0_5] : memref<24x256xf32, #tpu.memory_space<vmem>>, vector<4x128xf32>
    tpu.vector_store %arg7[%c16, %c0_5], %7 {strides = array<i32>} : memref<24x256xf32, #tpu.memory_space<vmem>>, vector<4x128xf32>,
    %c20 = arith.constant 20 : index
    %c0_6 = arith.constant 0 : index
    %9 = vector.load %arg7[%c20, %c0_6] : memref<24x256xf32, #tpu.memory_space<vmem>>, vector<4x128xf32>
    tpu.vector_store %arg7[%c20, %c0_6], %1 {strides = array<i32>} : memref<24x256xf32, #tpu.memory_space<vmem>>, vector<4x128xf32>,
    %c16_7 = arith.constant 16 : index
    %c0_8 = arith.constant 0 : index
    %10 = vector.load %arg7[%c16_7, %c0_8] : memref<24x256xf32, #tpu.memory_space<vmem>>, vector<4x124xf32>
    %c0_9 = arith.constant 0 : index
    %c4 = arith.constant 4 : index
    %11 = vector.load %arg7[%c0_9, %c4] : memref<24x256xf32, #tpu.memory_space<vmem>>, vector<4x124xf32>
    tpu.vector_store %arg7[%c0_9, %c4], %10 {strides = array<i32>} : memref<24x256xf32, #tpu.memory_space<vmem>>, vector<4x124xf32>,
    %c0_10 = arith.constant 0 : index
    %c0_11 = arith.constant 0 : index
    %12 = vector.load %arg7[%c0_10, %c0_11] : memref<24x256xf32, #tpu.memory_space<vmem>>, vector<4x4xf32>
    tpu.vector_store %arg7[%c0_10, %c0_11], %5 {strides = array<i32>} : memref<24x256xf32, #tpu.memory_space<vmem>>, vector<4x4xf32>,
    %c4_12 = arith.constant 4 : index
    %c0_13 = arith.constant 0 : index
    %13 = vector.load %arg7[%c4_12, %c0_13] : memref<24x256xf32, #tpu.memory_space<vmem>>, vector<4x128xf32>
    tpu.vector_store %arg7[%c4_12, %c0_13], %1 {strides = array<i32>} : memref<24x256xf32, #tpu.memory_space<vmem>>, vector<4x128xf32>,
    %c16_14 = arith.constant 16 : index
    %c0_15 = arith.constant 0 : index
    %14 = vector.load %arg7[%c16_14, %c0_15] : memref<24x256xf32, #tpu.memory_space<vmem>>, vector<4x126xf32>
    %c8 = arith.constant 8 : index
    %c2 = arith.constant 2 : index
    %15 = vector.load %arg7[%c8, %c2] : memref<24x256xf32, #tpu.memory_space<vmem>>, vector<4x126xf32>
    tpu.vector_store %arg7[%c8, %c2], %14 {strides = array<i32>} : memref<24x256xf32, #tpu.memory_space<vmem>>, vector<4x126xf32>,
    %16 = vector.extract_strided_slice %5 {offsets = [0, 2], sizes = [4, 2], strides = [1, 1]} : vector<4x4xf32> to vector<4x2xf32>
    %c8_16 = arith.constant 8 : index
    %c0_17 = arith.constant 0 : index
    %17 = vector.load %arg7[%c8_16, %c0_17] : memref<24x256xf32, #tpu.memory_space<vmem>>, vector<4x2xf32>
    tpu.vector_store %arg7[%c8_16, %c0_17], %16 {strides = array<i32>} : memref<24x256xf32, #tpu.memory_space<vmem>>, vector<4x2xf32>,
    %c12 = arith.constant 12 : index
    %c0_18 = arith.constant 0 : index
    %18 = vector.load %arg7[%c12, %c0_18] : memref<24x256xf32, #tpu.memory_space<vmem>>, vector<4x128xf32>
    tpu.vector_store %arg7[%c12, %c0_18], %1 {strides = array<i32>} : memref<24x256xf32, #tpu.memory_space<vmem>>, vector<4x128xf32>,
    %c1 = arith.constant 1 : index
    %c0_19 = arith.constant 0 : index
    %c124_20 = arith.constant 124 : index
    %19 = vector.load %arg3[%c1, %c0_19, %c124_20] : memref<2x4x128xf32, #tpu.memory_space<vmem>>, vector<1x4x4xf32>
    %20 = vector.shape_cast %19 : vector<1x4x4xf32> to vector<4x4xf32>
    %cst_21 = arith.constant 0.000000e+00 : f32
    %21 = vector.broadcast %cst_21 : f32 to vector<4x4xf32>
    %22 = arith.select %0, %21, %20 : vector<4x4xf32>
    %c1_22 = arith.constant 1 : index
    %c0_23 = arith.constant 0 : index
    %c0_24 = arith.constant 0 : index
    %23 = vector.load %arg2[%c1_22, %c0_23, %c0_24] : memref<2x4x128xf32, #tpu.memory_space<vmem>>, vector<1x4x128xf32>
    %24 = vector.shape_cast %23 : vector<1x4x128xf32> to vector<4x128xf32>
    %c16_25 = arith.constant 16 : index
    %c128 = arith.constant 128 : index
    %25 = vector.load %arg7[%c16_25, %c128] : memref<24x256xf32, #tpu.memory_space<vmem>>, vector<4x128xf32>
    tpu.vector_store %arg7[%c16_25, %c128], %24 {strides = array<i32>} : memref<24x256xf32, #tpu.memory_space<vmem>>, vector<4x128xf32>,
    %c20_26 = arith.constant 20 : index
    %c128_27 = arith.constant 128 : index
    %26 = vector.load %arg7[%c20_26, %c128_27] : memref<24x256xf32, #tpu.memory_space<vmem>>, vector<4x128xf32>
    tpu.vector_store %arg7[%c20_26, %c128_27], %1 {strides = array<i32>} : memref<24x256xf32, #tpu.memory_space<vmem>>, vector<4x128xf32>,
    %c16_28 = arith.constant 16 : index
    %c128_29 = arith.constant 128 : index
    %27 = vector.load %arg7[%c16_28, %c128_29] : memref<24x256xf32, #tpu.memory_space<vmem>>, vector<4x124xf32>
    %c0_30 = arith.constant 0 : index
    %c132 = arith.constant 132 : index
    %28 = vector.load %arg7[%c0_30, %c132] : memref<24x256xf32, #tpu.memory_space<vmem>>, vector<4x124xf32>
    tpu.vector_store %arg7[%c0_30, %c132], %27 {strides = array<i32>} : memref<24x256xf32, #tpu.memory_space<vmem>>, vector<4x124xf32>,
    %c0_31 = arith.constant 0 : index
    %c128_32 = arith.constant 128 : index
    %29 = vector.load %arg7[%c0_31, %c128_32] : memref<24x256xf32, #tpu.memory_space<vmem>>, vector<4x4xf32>
    tpu.vector_store %arg7[%c0_31, %c128_32], %22 {strides = array<i32>} : memref<24x256xf32, #tpu.memory_space<vmem>>, vector<4x4xf32>,
    %c4_33 = arith.constant 4 : index
    %c128_34 = arith.constant 128 : index
    %30 = vector.load %arg7[%c4_33, %c128_34] : memref<24x256xf32, #tpu.memory_space<vmem>>, vector<4x128xf32>
    tpu.vector_store %arg7[%c4_33, %c128_34], %1 {strides = array<i32>} : memref<24x256xf32, #tpu.memory_space<vmem>>, vector<4x128xf32>,
    %c16_35 = arith.constant 16 : index
    %c128_36 = arith.constant 128 : index
    %31 = vector.load %arg7[%c16_35, %c128_36] : memref<24x256xf32, #tpu.memory_space<vmem>>, vector<4x126xf32>
    %c8_37 = arith.constant 8 : index
    %c130 = arith.constant 130 : index
    %32 = vector.load %arg7[%c8_37, %c130] : memref<24x256xf32, #tpu.memory_space<vmem>>, vector<4x126xf32>
    tpu.vector_store %arg7[%c8_37, %c130], %31 {strides = array<i32>} : memref<24x256xf32, #tpu.memory_space<vmem>>, vector<4x126xf32>,
    %33 = vector.extract_strided_slice %22 {offsets = [0, 2], sizes = [4, 2], strides = [1, 1]} : vector<4x4xf32> to vector<4x2xf32>
    %c8_38 = arith.constant 8 : index
    %c128_39 = arith.constant 128 : index
    %34 = vector.load %arg7[%c8_38, %c128_39] : memref<24x256xf32, #tpu.memory_space<vmem>>, vector<4x2xf32>
    tpu.vector_store %arg7[%c8_38, %c128_39], %33 {strides = array<i32>} : memref<24x256xf32, #tpu.memory_space<vmem>>, vector<4x2xf32>,
    %c12_40 = arith.constant 12 : index
    %c128_41 = arith.constant 128 : index
    %35 = vector.load %arg7[%c12_40, %c128_41] : memref<24x256xf32, #tpu.memory_space<vmem>>, vector<4x128xf32>
    tpu.vector_store %arg7[%c12_40, %c128_41], %1 {strides = array<i32>} : memref<24x256xf32, #tpu.memory_space<vmem>>, vector<4x128xf32>,
    %c0_42 = arith.constant 0 : index
    %c0_43 = arith.constant 0 : index
    %36 = vector.load %arg4[%c0_42, %c0_43] : memref<8x24xf32, #tpu.memory_space<vmem>>, vector<8x24xf32>
    %c0_44 = arith.constant 0 : index
    %c0_45 = arith.constant 0 : index
    %37 = vector.load %arg7[%c0_44, %c0_45] : memref<24x256xf32, #tpu.memory_space<vmem>>, vector<24x256xf32>
    %cst_46 = arith.constant dense<0.000000e+00> : vector<8x256xf32>
    %38 = tpu.matmul %36, %37, %cst_46 {dimension_numbers = #tpu.dot_dimension_numbers<[1], [0], [0], [1], [0, 0, 1, 1], [], []>} : vector<8x24xf32>, vector<24x256xf32>, vector<8x256xf32> -> vector<8x256xf32>
    %c0_47 = arith.constant 0 : index
    %c0_48 = arith.constant 0 : index
    %39 = vector.load %arg5[%c0_47, %c0_48] : memref<8x1xf32, #tpu.memory_space<vmem>>, vector<8x1xf32>
    %40 = vector.broadcast %39 : vector<8x1xf32> to vector<8x256xf32>
    %41 = arith.addf %38, %40 : vector<8x256xf32>
    %42 = vector.extract_strided_slice %41 {offsets = [0, 0], sizes = [8, 128], strides = [1, 1]} : vector<8x256xf32> to vector<8x128xf32>
    %c0_49 = arith.constant 0 : index
    %c0_50 = arith.constant 0 : index
    %c0_51 = arith.constant 0 : index
    %43 = vector.load %arg6[%c0_49, %c0_50, %c0_51] : memref<2x8x128xf32, #tpu.memory_space<vmem>>, vector<1x8x128xf32>
    %44 = vector.shape_cast %43 : vector<1x8x128xf32> to vector<8x128xf32>
    %45 = vector.shape_cast %42 : vector<8x128xf32> to vector<1x8x128xf32>
    tpu.vector_store %arg6[%c0_49, %c0_50, %c0_51], %45 {strides = array<i32>} : memref<2x8x128xf32, #tpu.memory_space<vmem>>, vector<1x8x128xf32>,
    %46 = vector.extract_strided_slice %41 {offsets = [0, 128], sizes = [8, 128], strides = [1, 1]} : vector<8x256xf32> to vector<8x128xf32>
    %c1_52 = arith.constant 1 : index
    %c0_53 = arith.constant 0 : index
    %c0_54 = arith.constant 0 : index
    %47 = vector.load %arg6[%c1_52, %c0_53, %c0_54] : memref<2x8x128xf32, #tpu.memory_space<vmem>>, vector<1x8x128xf32>
    %48 = vector.shape_cast %47 : vector<1x8x128xf32> to vector<8x128xf32>
    %49 = vector.shape_cast %46 : vector<8x128xf32> to vector<1x8x128xf32>
    tpu.vector_store %arg6[%c1_52, %c0_53, %c0_54], %49 {strides = array<i32>} : memref<2x8x128xf32, #tpu.memory_space<vmem>>, vector<1x8x128xf32>,
    return
  }
  func.func @transform_0(%arg0: i32, %arg1: i32) -> (i32, i32, i32) {
    %c0_i32 = arith.constant 0 : i32
    %c0_i32_0 = arith.constant 0 : i32
    return %arg0, %c0_i32, %arg1 : i32, i32, i32
  }
  func.func @transform_1(%arg0: i32, %arg1: i32) -> (i32, i32, i32) {
    %c1_i32 = arith.constant 1 : i32
    %0 = arith.muli %arg1, %c1_i32 : i32
    %c1_i32_0 = arith.constant 1 : i32
    %1 = arith.subi %0, %c1_i32_0 : i32
    %c0_i32 = arith.constant 0 : i32
    %2 = arith.maxsi %1, %c0_i32 : i32
    %c0_i32_1 = arith.constant 0 : i32
    %c0_i32_2 = arith.constant 0 : i32
    return %arg0, %c0_i32_1, %2 : i32, i32, i32
  }
  func.func @transform_2(%arg0: i32, %arg1: i32) -> (i32, i32) {
    %c0_i32 = arith.constant 0 : i32
    %c0_i32_0 = arith.constant 0 : i32
    %c0_i32_1 = arith.constant 0 : i32
    return %c0_i32, %c0_i32_0 : i32, i32
  }
  func.func @transform_3(%arg0: i32, %arg1: i32) -> (i32, i32) {
    %c0_i32 = arith.constant 0 : i32
    %c0_i32_0 = arith.constant 0 : i32
    %c0_i32_1 = arith.constant 0 : i32
    return %c0_i32, %c0_i32_0 : i32, i32
  }
  func.func @transform_4(%arg0: i32, %arg1: i32) -> (i32, i32, i32) {
    %c0_i32 = arith.constant 0 : i32
    %c0_i32_0 = arith.constant 0 : i32
    return %arg0, %c0_i32, %arg1 : i32, i32, i32
  }
}

</mosaic_0001>

<bundles_post_ra>
// kernel: tpu_custom_call.1
= control target key start
LH: loop header
LB: loop body
LE: loop exit
PB: predicated region body
PF: predicated region fallthrough
CT: control target
= control target key end

     0   :  { %9 = vsyncpa [#allocation4], 0  ;;  %s360_s0 = inlined_call_operand.vmem [shape: f32[2,4,128], index: 0, kind: input, shape index: {}]   ;;  %s361_s1 = inlined_call_operand.hbm [shape: f32[2,4,128], index: 1, kind: input, shape index: {}]   ;;  %s362_s2 = inlined_call_operand.vmem [shape: f32[8,24], index: 2, kind: input, shape index: {}]   ;;  %s363_s3 = inlined_call_operand.vmem [shape: f32[8,1], index: 3, kind: input, shape index: {}]   ;;  %s364_s4 = inlined_call_operand.hbm [shape: f32[2,8,128], index: 4, kind: output, shape index: {}]  }
   0x1   :  { %10 = vsyncpa [#allocation5], 0  ;;  %s290_s15 = smov [#allocation3]   ;;  %s242_s19 = scalar_lea.hbm %s361_s1, 128 }
   0x2   :  { %s23_s16 = sshll.u32 %s290_s15, 4  ;;  %p243_p0 = scmp.ne.s32.totalorder %s361_s1, %s242_s19  ;;  %s24_s16 = int_to_ptr.vmem [resolvable:$true] %s23_s16 }
   0x3   :  { %p246_p1 = scmp.lt.u32.totalorder %s242_s19, %s361_s1 }
   0x5   :  { %p248_p2 = pnand %p246_p1, %p243_p0 }
   0x7   :  { %251 = shalt.err (!%p248_p2)
}
   0x8   :  { %s252_s24 = scalar_lea.vmem %s24_s16, 128  ;;  %p257_p4 = scmp.lt.s32.totalorder %s24_s16, %s24_s16 }
   0x9   :  { %p253_p3 = scmp.ne.s32.totalorder %s24_s16, %s252_s24  ;;  %p258_p5 = scmp.lt.s32.totalorder %s252_s24, %s252_s24 }
   0xb   :  { %p259_p6 = por %p258_p5, %p257_p4 }
   0xd   :  { %p260_p7 = pnand %p259_p6, %p253_p3 }
   0xf   :  { %263 = shalt.err (!%p260_p7)
}
  0x10   :  { %s291_s25 = smov 64   ;;  %s292_s26 = smov 4  }
  0x11   :  { %29 = dma.hbm_to_vmem [thread:$0]  %s361_s1, 128, %s24_s16, [#allocation4], %s291_s25, %s291_s25, %s292_s26  }
  0x12   :  { %286 = dma.done.wait [#allocation4], 128  }
  0x13   :  { %287 = vsyncadd [#allocation4], 4294967168  ;;  %v293_v0 = vmov 0.0   ;;  %v216_v1 = vld [vmem:[%s360_s0 + $0x4] sm:$0xf]  ;;  %s294_s1 = smov 2  }
  0x14   :  { %48 = vst [vmem:[#allocation2 + $0x20] sm:$0xf0] %v293_v0  ;;  %62 = vst [vmem:[#allocation2] sm:$0xf0] %v293_v0  ;;  %187 = vmatprep.mubr.f32.mxu0 %v293_v0  ;;  %v46_v2 = vld [vmem:[%s360_s0] sm:$0xf] }
  0x15   :  { %75 = vst [vmem:[#allocation2 + $0x10] sm:$0xf0] %v293_v0  ;;  %82 = vst [vmem:[#allocation2 + $0x28] sm:$0xf0] %v293_v0  ;;  %v113_v7 = vld [vmem:[%s363_s3] sm:$0xff]  ;;  %v295_v8 = vmov 0  }
  0x16   :  { %94 = vst [vmem:[#allocation2 + $0x8] sm:$0xf0] %v293_v0  ;;  %105 = vst [vmem:[#allocation2 + $0x18] sm:$0xf0] %v293_v0  ;;  %241 = vset.pattern.permute.xlu0 %v295_v8  ;;  %vm54_vm0 = vcmask 1043488   ;;  %vm68_vm1 = vcmask 1043472  }
  0x17   :  { %81 = vst [vmem:[#allocation2 + $0x28] sm:$0xf] %v216_v1  ;;  %47 = vst [vmem:[#allocation2 + $0x20] sm:$0xf] %v46_v2  ;;  %vm60_vm2 = vcmask 27648   ;;  %vm73_vm3 = vcmask 11264  }
  0x18   :  { %v106_v27 = vld [vmem:[%s362_s2] sm:$0xff]  ;;  %vm119_vm4 = vcmask 195584   ;;  %s296_s9 = smov [#allocation6]  }
  0x19   :  { %s202_s10 = sshll.u32 %s296_s9, 4  ;;  %s203_s10 = int_to_ptr.vmem [resolvable:$true] %s202_s10 }
  0x1a   :  { %s264_s11 = scalar_lea.vmem %s203_s10, 256  ;;  %p269_p9 = scmp.lt.s32.totalorder %s203_s10, %s203_s10 }
  0x1b   :  { %p265_p8 = scmp.ne.s32.totalorder %s203_s10, %s264_s11  ;;  %p270_p10 = scmp.lt.s32.totalorder %s264_s11, %s264_s11 }
  0x1d   :  { %p271_p11 = por %p270_p10, %p269_p9 }
  0x1e   :  { %v83_v3 = vld [vmem:[#allocation2 + $0x28] sm:$0xf]  ;;  %v49_v4 = vld [vmem:[#allocation2 + $0x20] sm:$0xf] }
  0x1f   :  { %85 = vrot.lane.b32.xlu0 %v83_v3, %s292_s26  ;;  %51 = vrot.lane.b32.xlu1 %v49_v4, %s292_s26  ;;  %v95_v5 = vld [vmem:[#allocation2 + $0x28] sm:$0xf]  ;;  %v63_v6 = vld [vmem:[#allocation2 + $0x20] sm:$0xf]  ;;  %p272_p12 = pnand %p271_p11, %p265_p8 }
  0x20   :  { %v112_v25 = vld [vmem:[#allocation2 + $0x28] sm:$0xff]  ;;  %v111_v26 = vld [vmem:[#allocation2 + $0x20] sm:$0xff] }
  0x23   :  { %97 = vrot.lane.b32.xlu0 %v95_v5, %s294_s1  ;;  %65 = vrot.lane.b32.xlu1 %v63_v6, %s294_s1 }
  0x27   :  { %232 = vrot.lane.b32.xlu0 %v293_v0, %s292_s26  ;;  %237 = vrot.lane.b32.xlu1 %v293_v0, %s294_s1 }
  0x2b   :  { %116 = vperm.xlu0 %241, %v113_v7  }
  0x91   :  { %v86_v9 = vpop.permute.xlu0 %85  ;;  %v52_v10 = vpop.permute.xlu1 %51 }
  0x92   :  { %88 = vst.msk [vmem:[#allocation2 + $0x8] sm:$0xf] %vm54_vm0, %v86_v9  ;;  %55 = vst.msk [vmem:[#allocation2] sm:$0xf] %vm54_vm0, %v52_v10 }
  0x95   :  { %v98_v11 = vpop.permute.xlu0 %97  ;;  %v66_v12 = vpop.permute.xlu1 %65 }
  0x96   :  { %100 = vst.msk [vmem:[#allocation2 + $0x18] sm:$0xf] %vm68_vm1, %v98_v11  ;;  %69 = vst.msk [vmem:[#allocation2 + $0x10] sm:$0xf] %vm68_vm1, %v66_v12 }
  0x99   :  { %v233_v13 = vpop.permute.xlu0 %232  ;;  %v238_v14 = vpop.permute.xlu1 %237 }
  0x9a   :  { %v235_v15 = vunpack.i.h.bf16 %v233_v13  ;;  %v234_v16 = vunpack.i.l.bf16 %v233_v13  ;;  %v240_v17 = vunpack.i.h.bf16 %v238_v14  ;;  %v239_v18 = vunpack.i.l.bf16 %v238_v14 }
  0x9c   :  { %61 = vst.msk [vmem:[#allocation2] sm:$0xf] %vm60_vm2, %v235_v15  ;;  %93 = vst.msk [vmem:[#allocation2 + $0x8] sm:$0xf] %vm60_vm2, %v234_v16 }
  0x9d   :  { %74 = vst.msk [vmem:[#allocation2 + $0x10] sm:$0xf] %vm73_vm3, %v240_v17  ;;  %104 = vst.msk [vmem:[#allocation2 + $0x18] sm:$0xf] %vm73_vm3, %v239_v18 }
  0xa3   :  { %v108_v19 = vld [vmem:[#allocation2 + $0x8] sm:$0xff]  ;;  %v107_v21 = vld [vmem:[#allocation2] sm:$0xff] }
  0xa4   :  { %v110_v20 = vld [vmem:[#allocation2 + $0x18] sm:$0xff]  ;;  %v109_v23 = vld [vmem:[#allocation2 + $0x10] sm:$0xff] }
  0xa5   :  { %v218_v22 = vpack.c.bf16 %v110_v20, %v108_v19  ;;  %v220_v24 = vpack.c.bf16 %v109_v23, %v107_v21 }
  0xa7   :  { %219 = vmatprep.subr.bf16.mxu0 %v218_v22 }
  0xa8   :  { %221 = vmatpush1.bf16.msra.mxu0 %v220_v24 }
  0xa9   :  { %127 = vmatprep.subr.mxu0 %v112_v25 }
  0xaa   :  { %v117_v28 = vpop.permute.xlu0 %116 }
  0xac   :  { %128 = vmatpush1.msra.mxu0 %v111_v26 }
  0xad   :  { %217 = vmatmul.mubr.msk.f32.vlgmr.msra.gmra.mrb[0].mxu0 %vm119_vm4, %v106_v27 }
 0x180   :  { %v189_v29 = vpop.f32.mrb[0].mxu0 }
 0x181   :  { %v190_v30 = vadd.f32 %v189_v29, %v117_v28  ;;  %v191_v31 = vpop.f32.mrb[1].mxu0 }
 0x182   :  { %v192_v32 = vadd.f32 %v191_v31, %v117_v28 }
 0x183   :  { %194 = vst [vmem:[#allocation6] sm:$0xff] %v190_v30 }
 0x184   :  { %196 = vst [vmem:[#allocation6 + $0x8] sm:$0xff] %v192_v32 }
 0x185   :  { %275 = shalt.err (!%p272_p12)
}
 0x186   :  { %s276_s13 = scalar_lea.hbm %s364_s4, 256 }
 0x187   :  { %p277_p13 = scmp.ne.s32.totalorder %s364_s4, %s276_s13  ;;  %p280_p0 = scmp.lt.u32.totalorder %s276_s13, %s364_s4 }
 0x189   :  { %p282_p1 = pnand %p280_p0, %p277_p13 }
 0x18b   :  { %285 = shalt.err (!%p282_p1)
}
 0x18c   :  { %s297_s18 = smov 128   ;;  %s298_s19 = smov 8  }
 0x18d   :  { %208 = dma.vmem_to_hbm [thread:$0]  %s203_s10, 256, %s364_s4, [#allocation5], %s297_s18, %s297_s18, %s298_s19  }
 0x18e   :  { %288 = dma.done.wait [#allocation5], 256  }
 0x18f   :  { %289 = vsyncadd [#allocation5], 4294967040 }
 0x190   :  { %212 = vsyncpa [#allocation4], 1 }
 0x191   :  { %213 = vsyncpa [#allocation5], 1 }

</bundles_post_ra>
